<compile_context>
chip_gen: v7x
topology: tpu7x:2x2x1
jax: 0.10.0
libtpu: 0.0.40
codegen_flags: <defaults>
</compile_context>

<pallas_src>
import functools

import jax
import jax.numpy as jnp
from jax.experimental import pallas as pl
from jax.experimental.pallas import tpu as pltpu

_LN_EPS = 1e-5
_MAX_TB = 8  # cap on batch rows folded per grid step (kernel unrolls over them)


def _vmem_capacity_bytes():
    """Per-chip VMEM capacity (v5e/v6e: 128 MiB, v7x: 64 MiB); conservative default."""
    try:
        cap = int(pltpu.get_tpu_info().vmem_capacity_bytes)
        if cap > 0:
            return cap
    except Exception:
        pass
    return 64 * 1024 * 1024  # assume the smallest (v7x) if the query fails


def _fused_step_bytes(tb, n, dh, x_bytes, out_bytes):
    """Estimated VMEM footprint of one fused grid step: double-buffered res/gate/out
    blocks, grid-invariant operands (W bf16, bias, gamma, beta, double-buffered by
    the pipeline even though fetched once), and f32 in-kernel temporaries."""
    block = tb * n * dh
    pipeline = 2 * block * (2 * x_bytes + out_bytes)
    invariants = 2 * (n * n * 2 + n * 4 + 2 * dh * 4)
    temps = 4 * n * dh * 4  # per-row f32 intermediates (g, centered, normalized, proj)
    return pipeline + invariants + temps


def _apply_step_bytes(n, tdh, x_bytes, out_bytes):
    """Estimated VMEM footprint of one two-pass apply-kernel grid step."""
    block = n * tdh
    pipeline = 2 * block * (2 * x_bytes + out_bytes)
    invariants = 2 * (n * n * 2 + n * 4 + 2 * tdh * 4) + 4 * n * 4  # + mean/rstd
    temps = 4 * block * 4
    return pipeline + invariants + temps


def _pick_tb(B, N, Dh, x_bytes, out_bytes, budget):
    """Largest batch fold (divisor of B, <= _MAX_TB) whose fused step fits budget."""
    fits = [t for t in range(1, min(B, _MAX_TB) + 1)
            if B % t == 0 and _fused_step_bytes(t, N, Dh, x_bytes, out_bytes) <= budget]
    if not fits:
        return None
    tb = max(fits)
    # Prefer >= 2 grid steps (v7x has 2 TensorCores sharing the "parallel" axis) when
    # each block still stages a meaningful amount of data; otherwise fold fully to
    # amortize per-grid-step overhead on small shapes.
    if B // tb < 2:
        two_step = [t for t in fits if B // t >= 2]
        if two_step:
            t2 = max(two_step)
            if t2 * N * Dh * (2 * x_bytes + out_bytes) >= (1 << 20):
                tb = t2
    return tb


def _pick_dh_tile(Dh, N, x_bytes, out_bytes, budget):
    """Largest multiple of 128 dividing Dh whose apply-pass footprint fits budget."""
    best = 128
    t = 128
    while t <= Dh:
        if Dh % t == 0 and _apply_step_bytes(N, t, x_bytes, out_bytes) <= budget:
            best = t
        t += 128
    return best


# ----------------------------- fused single-pass path ------------------------------

def _sgu_fused_kernel(res_ref, gate_ref, w_ref, b_ref, gamma_ref, beta_ref, out_ref):
    """LayerNorm (subtract-mean form) + sequence-mixing matmul + bias + gating,
    unrolled over the TB batch rows folded into this block."""
    w = w_ref[...]                                     # (N, N) bf16, loaded once
    b = b_ref[...]                                     # (N, 1) f32
    gamma = gamma_ref[...]                             # (1, Dh) f32
    beta = beta_ref[...]                               # (1, Dh) f32
    for i in range(res_ref.shape[0]):                  # trace-time unroll, TB <= 8
        g = gate_ref[i].astype(jnp.float32)            # (N, Dh)
        mean = jnp.mean(g, axis=-1, keepdims=True)     # (N, 1)
        gc = g - mean
        var = jnp.mean(gc * gc, axis=-1, keepdims=True)
        g_norm = gc * jax.lax.rsqrt(var + _LN_EPS) * gamma + beta
        # Conv1d with kernel size 1 over the sequence axis == (N,N) @ (N,Dh) on the
        # MXU; bf16 operands, f32 accumulation.
        proj = jnp.dot(w, g_norm.astype(jnp.bfloat16),
                       preferred_element_type=jnp.float32) + b
        # Gate in f32, downcast exactly once.
        out_ref[i] = (proj * res_ref[i].astype(jnp.float32)).astype(out_ref.dtype)


# ------------------------------ two-pass fallback path ------------------------------

def _ln_stats_kernel(gate_ref, mean_ref, rstd_ref, sum_ref, sq_ref, *, dh):
    """Accumulate per-row sum / sum-of-squares over Dh tiles; emit mean & rstd."""
    d = pl.program_id(1)

    @pl.when(d == 0)
    def _():
        sum_ref[...] = jnp.zeros_like(sum_ref)
        sq_ref[...] = jnp.zeros_like(sq_ref)

    g = gate_ref[0].astype(jnp.float32)                       # (N, TDH)
    sum_ref[...] += jnp.sum(g, axis=-1, keepdims=True)        # (N, 1)
    sq_ref[...] += jnp.sum(g * g, axis=-1, keepdims=True)     # (N, 1)

    @pl.when(d == pl.num_programs(1) - 1)
    def _():
        inv = jnp.float32(1.0 / dh)
        mean = sum_ref[...] * inv
        # E[g^2] - mean^2 can cancel slightly negative in f32 -> clamp before rsqrt.
        var = jnp.maximum(sq_ref[...] * inv - mean * mean, 0.0)
        mean_ref[0] = mean
        rstd_ref[0] = jax.lax.rsqrt(var + _LN_EPS)


def _sgu_apply_kernel(res_ref, gate_ref, mean_ref, rstd_ref, w_ref, b_ref,
                      gamma_ref, beta_ref, out_ref):
    # res/gate/out: (1, N, TDH); mean/rstd: (1, N, 1); w: (N, N) bf16;
    # b: (N, 1) f32; gamma/beta: (1, TDH) f32.
    g = gate_ref[0].astype(jnp.float32)                        # (N, TDH)
    g_norm = (g - mean_ref[0]) * rstd_ref[0]
    g_norm = g_norm * gamma_ref[...] + beta_ref[...]
    proj = jnp.dot(w_ref[...], g_norm.astype(jnp.bfloat16),
                   preferred_element_type=jnp.float32)
    proj = proj + b_ref[...]
    # Gate in f32, downcast exactly once (no double rounding for low-precision out).
    out_ref[0] = (proj * res_ref[0].astype(jnp.float32)).astype(out_ref.dtype)


# ------------------------------------ wrapper ---------------------------------------

def spatial_gating_unit(x, weight, bias, gamma, beta):
    """SpatialGatingUnit forward.

    x: (B, N, D); weight: (N, N) (proj.weight squeezed); bias: (N,);
    gamma/beta: (D//2,) LayerNorm affine params.  Returns (B, N, D//2).
    """
    B, N, D = x.shape
    Dh = D // 2
    assert D == 2 * Dh, "channel dim must be even (x.chunk(2, dim=-1))"

    x_bytes = x.dtype.itemsize
    out_bytes = x_bytes
    cap = _vmem_capacity_bytes()
    budget = cap // 2                      # tile-selection budget (leave headroom)

    if Dh % 128 == 0:
        # Lane-aligned: res/gate split lives purely in the BlockSpec index maps
        # (no wrapper-side slice -> no extra HBM round trip of x).
        res_src, gate_src = x, x
        gate_blk = 1                       # channel axis of x has 2 blocks of Dh
        aligned = True
    else:
        # TODO(synk): sub-128 channel halves fall back to wrapper-side slices
        # (block == full sliced dim, so the (8,128) lane constraint does not apply).
        res_src, gate_src = x[..., :Dh], x[..., Dh:]
        gate_blk = 0
        aligned = False

    w_bf16 = weight.astype(jnp.bfloat16)
    bias2 = bias.astype(jnp.float32).reshape(N, 1)
    gamma2 = gamma.astype(jnp.float32).reshape(1, Dh)
    beta2 = beta.astype(jnp.float32).reshape(1, Dh)

    tb = _pick_tb(B, N, Dh, x_bytes, out_bytes, budget)
    if tb is not None:
        # ---------------- fused single-pass path (primary) --------------------------
        step_bytes = _fused_step_bytes(tb, N, Dh, x_bytes, out_bytes)
        vmem_limit = max(32 << 20, min(2 * step_bytes + (8 << 20), int(cap * 0.85)))
        return pl.pallas_call(
            _sgu_fused_kernel,
            out_shape=jax.ShapeDtypeStruct((B, N, Dh), x.dtype),
            grid_spec=pltpu.PrefetchScalarGridSpec(
                num_scalar_prefetch=0,
                grid=(B // tb,),
                in_specs=[
                    pl.BlockSpec((tb, N, Dh), lambda b: (b, 0, 0)),          # res
                    pl.BlockSpec((tb, N, Dh), lambda b: (b, 0, gate_blk)),   # gate
                    pl.BlockSpec((N, N), lambda b: (0, 0)),                  # W (bf16)
                    pl.BlockSpec((N, 1), lambda b: (0, 0)),                  # conv bias
                    pl.BlockSpec((1, Dh), lambda b: (0, 0)),                 # LN gamma
                    pl.BlockSpec((1, Dh), lambda b: (0, 0)),                 # LN beta
                ],
                out_specs=pl.BlockSpec((tb, N, Dh), lambda b: (b, 0, 0)),
            ),
            compiler_params=pltpu.CompilerParams(
                dimension_semantics=("parallel",),
                vmem_limit_bytes=vmem_limit),
        )(res_src, gate_src, w_bf16, bias2, gamma2, beta2)

    # ---------------- two-pass fallback for slabs too large to fuse -----------------
    # TODO(synk): for very large N (~>1K per-core budgets), also tile the sequence
    # axis of the matmul with an 'arbitrary' contraction grid axis + f32 accumulator
    # instead of keeping the full (N,N) W and (N,tdh) gate resident.
    if aligned:
        tdh = _pick_dh_tile(Dh, N, x_bytes, out_bytes, budget)
    else:
        tdh = Dh
    n_d = Dh // tdh
    goff = n_d if aligned else 0           # gate half = second n_d channel blocks of x

    vmem_limit = max(32 << 20,
                     min(2 * _apply_step_bytes(N, tdh, x_bytes, out_bytes) + (8 << 20),
                         int(cap * 0.85)))

    # Pass 1: per-(batch, row) LayerNorm statistics, tiled over Dh (reduction last).
    mean, rstd = pl.pallas_call(
        functools.partial(_ln_stats_kernel, dh=Dh),
        out_shape=(jax.ShapeDtypeStruct((B, N, 1), jnp.float32),
                   jax.ShapeDtypeStruct((B, N, 1), jnp.float32)),
        grid_spec=pltpu.PrefetchScalarGridSpec(
            num_scalar_prefetch=0,
            grid=(B, n_d),
            in_specs=[
                pl.BlockSpec((1, N, tdh), lambda b, d: (b, 0, d + goff)),
            ],
            out_specs=[
                pl.BlockSpec((1, N, 1), lambda b, d: (b, 0, 0)),
                pl.BlockSpec((1, N, 1), lambda b, d: (b, 0, 0)),
            ],
            scratch_shapes=[pltpu.VMEM((N, 1), jnp.float32),
                            pltpu.VMEM((N, 1), jnp.float32)]),
        compiler_params=pltpu.CompilerParams(
            dimension_semantics=("parallel", "arbitrary"),
            vmem_limit_bytes=vmem_limit),
    )(gate_src)

    # Pass 2: normalize + sequence-mixing matmul + bias + gating, tiled over (B, Dh).
    out = pl.pallas_call(
        _sgu_apply_kernel,
        out_shape=jax.ShapeDtypeStruct((B, N, Dh), x.dtype),
        grid_spec=pltpu.PrefetchScalarGridSpec(
            num_scalar_prefetch=0,
            grid=(B, n_d),
            in_specs=[
                pl.BlockSpec((1, N, tdh), lambda b, d: (b, 0, d)),           # res
                pl.BlockSpec((1, N, tdh), lambda b, d: (b, 0, d + goff)),    # gate
                pl.BlockSpec((1, N, 1), lambda b, d: (b, 0, 0)),             # mean
                pl.BlockSpec((1, N, 1), lambda b, d: (b, 0, 0)),             # rstd
                pl.BlockSpec((N, N), lambda b, d: (0, 0)),                   # W (bf16)
                pl.BlockSpec((N, 1), lambda b, d: (0, 0)),                   # conv bias
                pl.BlockSpec((1, tdh), lambda b, d: (0, d)),                 # LN gamma
                pl.BlockSpec((1, tdh), lambda b, d: (0, d)),                 # LN beta
            ],
            out_specs=pl.BlockSpec((1, N, tdh), lambda b, d: (b, 0, d)),
        ),
        compiler_params=pltpu.CompilerParams(
            dimension_semantics=("parallel", "parallel"),
            vmem_limit_bytes=vmem_limit),
    )(res_src, gate_src, mean, rstd, w_bf16, bias2, gamma2, beta2)
    return out


def reference(x, weight, bias, gamma, beta):
    B, N, D = x.shape
    Dh = D // 2
    res, gate = x[..., :Dh], x[..., Dh:]
    mean = gate.mean(-1, keepdims=True)
    var = ((gate - mean) ** 2).mean(-1, keepdims=True)
    gate = (gate - mean) / jnp.sqrt(var + _LN_EPS) * gamma + beta
    gate = jnp.einsum("ij,bjd->bid", weight, gate) + bias[None, :, None]
    return gate * res


if __name__ == "__main__":
    B, dim_seq, dim = 2, 8, 256          # batch, seq len (N), channels (D)
    Dh = dim // 2

    key = jax.random.PRNGKey(0)
    kx, kw = jax.random.split(key)

    x = jax.random.normal(kx, (B, dim_seq, dim), dtype=jnp.float32)

    # Deterministic parameter init mirroring the module's __init__:
    init_eps = 0.001 / dim_seq
    weight = jax.random.uniform(kw, (dim_seq, dim_seq), dtype=jnp.float32,
                                minval=-init_eps, maxval=init_eps)
    bias = jnp.ones((dim_seq,), dtype=jnp.float32)
    gamma = jnp.ones((Dh,), dtype=jnp.float32)   # LayerNorm weight
    beta = jnp.zeros((Dh,), dtype=jnp.float32)   # LayerNorm bias

    out = spatial_gating_unit(x, weight, bias, gamma, beta)
    out = jax.block_until_ready(out)

    ref = reference(x, weight, bias, gamma, beta)
    assert out.shape == (B, dim_seq, Dh)
    # bf16 MXU matmul (f32 accumulate) -> slightly looser tolerance than pure f32.
    assert jnp.allclose(out, ref, atol=1e-3, rtol=1e-3), "mismatch vs reference"

    print("KERNEL_OK")
</pallas_src>

<mosaic_0001>
module attributes {stable_mosaic.version = 11 : i64} {
  func.func @_sgu_fused_kernel(%arg0: i32, %arg1: memref<2x8x128xf32, #tpu.memory_space<vmem>>, %arg2: memref<2x8x128xf32, #tpu.memory_space<vmem>>, %arg3: memref<8x8xbf16, #tpu.memory_space<vmem>>, %arg4: memref<8x1xf32, #tpu.memory_space<vmem>>, %arg5: memref<1x128xf32, #tpu.memory_space<vmem>>, %arg6: memref<1x128xf32, #tpu.memory_space<vmem>>, %arg7: memref<2x8x128xf32, #tpu.memory_space<vmem>>) attributes {dimension_semantics = [#tpu.dimension_semantics<parallel>], iteration_bounds = array<i64: 1>, scalar_prefetch = 0 : i64, scratch_operands = 0 : i64, tpu.core_type = #tpu.core_type<tc>, window_params = [{transform_indices = @transform_0, window_bounds = array<i64: 2, 8, 128>}, {transform_indices = @transform_1, window_bounds = array<i64: 2, 8, 128>}, {pipeline_mode = #tpu.pipeline_mode<synchronous>, transform_indices = @transform_2, window_bounds = array<i64: 8, 8>}, {pipeline_mode = #tpu.pipeline_mode<synchronous>, transform_indices = @transform_3, window_bounds = array<i64: 8, 1>}, {pipeline_mode = #tpu.pipeline_mode<synchronous>, transform_indices = @transform_4, window_bounds = array<i64: 1, 128>}, {pipeline_mode = #tpu.pipeline_mode<synchronous>, transform_indices = @transform_5, window_bounds = array<i64: 1, 128>}, {transform_indices = @transform_6, window_bounds = array<i64: 2, 8, 128>}]} {
    %c0 = arith.constant 0 : index
    %c0_0 = arith.constant 0 : index
    %0 = vector.load %arg3[%c0, %c0_0] : memref<8x8xbf16, #tpu.memory_space<vmem>>, vector<8x8xbf16>
    %c0_1 = arith.constant 0 : index
    %c0_2 = arith.constant 0 : index
    %1 = vector.load %arg4[%c0_1, %c0_2] : memref<8x1xf32, #tpu.memory_space<vmem>>, vector<8x1xf32>
    %c0_3 = arith.constant 0 : index
    %c0_4 = arith.constant 0 : index
    %2 = vector.load %arg5[%c0_3, %c0_4] : memref<1x128xf32, #tpu.memory_space<vmem>>, vector<1x128xf32>
    %c0_5 = arith.constant 0 : index
    %c0_6 = arith.constant 0 : index
    %3 = vector.load %arg6[%c0_5, %c0_6] : memref<1x128xf32, #tpu.memory_space<vmem>>, vector<1x128xf32>
    %c0_7 = arith.constant 0 : index
    %c0_8 = arith.constant 0 : index
    %c0_9 = arith.constant 0 : index
    %4 = vector.load %arg2[%c0_7, %c0_8, %c0_9] : memref<2x8x128xf32, #tpu.memory_space<vmem>>, vector<1x8x128xf32>
    %5 = vector.shape_cast %4 : vector<1x8x128xf32> to vector<8x128xf32>
    %cst = arith.constant dense<0.000000e+00> : vector<8xf32>
    %6 = vector.multi_reduction <add>, %5, %cst [1] : vector<8x128xf32> to vector<8xf32>
    %7 = vector.shape_cast %6 : vector<8xf32> to vector<8x1xf32>
    %cst_10 = arith.constant 1.280000e+02 : f32
    %8 = vector.broadcast %cst_10 : f32 to vector<8x1xf32>
    %9 = arith.divf %7, %8 : vector<8x1xf32>
    %10 = vector.broadcast %9 : vector<8x1xf32> to vector<8x128xf32>
    %11 = arith.subf %5, %10 : vector<8x128xf32>
    %12 = arith.mulf %11, %11 : vector<8x128xf32>
    %cst_11 = arith.constant dense<0.000000e+00> : vector<8xf32>
    %13 = vector.multi_reduction <add>, %12, %cst_11 [1] : vector<8x128xf32> to vector<8xf32>
    %14 = vector.shape_cast %13 : vector<8xf32> to vector<8x1xf32>
    %cst_12 = arith.constant 1.280000e+02 : f32
    %15 = vector.broadcast %cst_12 : f32 to vector<8x1xf32>
    %16 = arith.divf %14, %15 : vector<8x1xf32>
    %cst_13 = arith.constant 9.99999974E-6 : f32
    %17 = vector.broadcast %cst_13 : f32 to vector<8x1xf32>
    %18 = arith.addf %16, %17 : vector<8x1xf32>
    %19 = math.rsqrt %18 : vector<8x1xf32>
    %20 = vector.broadcast %19 : vector<8x1xf32> to vector<8x128xf32>
    %21 = arith.mulf %11, %20 : vector<8x128xf32>
    %22 = vector.broadcast %2 : vector<1x128xf32> to vector<8x128xf32>
    %23 = arith.mulf %21, %22 : vector<8x128xf32>
    %24 = vector.broadcast %3 : vector<1x128xf32> to vector<8x128xf32>
    %25 = arith.addf %23, %24 : vector<8x128xf32>
    %26 = arith.truncf %25 : vector<8x128xf32> to vector<8x128xbf16>
    %cst_14 = arith.constant dense<0.000000e+00> : vector<8x128xf32>
    %27 = tpu.matmul %0, %26, %cst_14 {dimension_numbers = #tpu.dot_dimension_numbers<[1], [0], [0], [1], [0, 0, 1, 1], [], []>} : vector<8x8xbf16>, vector<8x128xbf16>, vector<8x128xf32> -> vector<8x128xf32>
    %28 = vector.broadcast %1 : vector<8x1xf32> to vector<8x128xf32>
    %29 = arith.addf %27, %28 : vector<8x128xf32>
    %c0_15 = arith.constant 0 : index
    %c0_16 = arith.constant 0 : index
    %c0_17 = arith.constant 0 : index
    %30 = vector.load %arg1[%c0_15, %c0_16, %c0_17] : memref<2x8x128xf32, #tpu.memory_space<vmem>>, vector<1x8x128xf32>
    %31 = vector.shape_cast %30 : vector<1x8x128xf32> to vector<8x128xf32>
    %32 = arith.mulf %29, %31 : vector<8x128xf32>
    %c0_18 = arith.constant 0 : index
    %c0_19 = arith.constant 0 : index
    %c0_20 = arith.constant 0 : index
    %33 = vector.load %arg7[%c0_18, %c0_19, %c0_20] : memref<2x8x128xf32, #tpu.memory_space<vmem>>, vector<1x8x128xf32>
    %34 = vector.shape_cast %33 : vector<1x8x128xf32> to vector<8x128xf32>
    %35 = vector.shape_cast %32 : vector<8x128xf32> to vector<1x8x128xf32>
    tpu.vector_store %arg7[%c0_18, %c0_19, %c0_20], %35 {strides = array<i32>} : memref<2x8x128xf32, #tpu.memory_space<vmem>>, vector<1x8x128xf32>,
    %c1 = arith.constant 1 : index
    %c0_21 = arith.constant 0 : index
    %c0_22 = arith.constant 0 : index
    %36 = vector.load %arg2[%c1, %c0_21, %c0_22] : memref<2x8x128xf32, #tpu.memory_space<vmem>>, vector<1x8x128xf32>
    %37 = vector.shape_cast %36 : vector<1x8x128xf32> to vector<8x128xf32>
    %cst_23 = arith.constant dense<0.000000e+00> : vector<8xf32>
    %38 = vector.multi_reduction <add>, %37, %cst_23 [1] : vector<8x128xf32> to vector<8xf32>
    %39 = vector.shape_cast %38 : vector<8xf32> to vector<8x1xf32>
    %cst_24 = arith.constant 1.280000e+02 : f32
    %40 = vector.broadcast %cst_24 : f32 to vector<8x1xf32>
    %41 = arith.divf %39, %40 : vector<8x1xf32>
    %42 = vector.broadcast %41 : vector<8x1xf32> to vector<8x128xf32>
    %43 = arith.subf %37, %42 : vector<8x128xf32>
    %44 = arith.mulf %43, %43 : vector<8x128xf32>
    %cst_25 = arith.constant dense<0.000000e+00> : vector<8xf32>
    %45 = vector.multi_reduction <add>, %44, %cst_25 [1] : vector<8x128xf32> to vector<8xf32>
    %46 = vector.shape_cast %45 : vector<8xf32> to vector<8x1xf32>
    %cst_26 = arith.constant 1.280000e+02 : f32
    %47 = vector.broadcast %cst_26 : f32 to vector<8x1xf32>
    %48 = arith.divf %46, %47 : vector<8x1xf32>
    %cst_27 = arith.constant 9.99999974E-6 : f32
    %49 = vector.broadcast %cst_27 : f32 to vector<8x1xf32>
    %50 = arith.addf %48, %49 : vector<8x1xf32>
    %51 = math.rsqrt %50 : vector<8x1xf32>
    %52 = vector.broadcast %51 : vector<8x1xf32> to vector<8x128xf32>
    %53 = arith.mulf %43, %52 : vector<8x128xf32>
    %54 = vector.broadcast %2 : vector<1x128xf32> to vector<8x128xf32>
    %55 = arith.mulf %53, %54 : vector<8x128xf32>
    %56 = vector.broadcast %3 : vector<1x128xf32> to vector<8x128xf32>
    %57 = arith.addf %55, %56 : vector<8x128xf32>
    %58 = arith.truncf %57 : vector<8x128xf32> to vector<8x128xbf16>
    %cst_28 = arith.constant dense<0.000000e+00> : vector<8x128xf32>
    %59 = tpu.matmul %0, %58, %cst_28 {dimension_numbers = #tpu.dot_dimension_numbers<[1], [0], [0], [1], [0, 0, 1, 1], [], []>} : vector<8x8xbf16>, vector<8x128xbf16>, vector<8x128xf32> -> vector<8x128xf32>
    %60 = vector.broadcast %1 : vector<8x1xf32> to vector<8x128xf32>
    %61 = arith.addf %59, %60 : vector<8x128xf32>
    %c1_29 = arith.constant 1 : index
    %c0_30 = arith.constant 0 : index
    %c0_31 = arith.constant 0 : index
    %62 = vector.load %arg1[%c1_29, %c0_30, %c0_31] : memref<2x8x128xf32, #tpu.memory_space<vmem>>, vector<1x8x128xf32>
    %63 = vector.shape_cast %62 : vector<1x8x128xf32> to vector<8x128xf32>
    %64 = arith.mulf %61, %63 : vector<8x128xf32>
    %c1_32 = arith.constant 1 : index
    %c0_33 = arith.constant 0 : index
    %c0_34 = arith.constant 0 : index
    %65 = vector.load %arg7[%c1_32, %c0_33, %c0_34] : memref<2x8x128xf32, #tpu.memory_space<vmem>>, vector<1x8x128xf32>
    %66 = vector.shape_cast %65 : vector<1x8x128xf32> to vector<8x128xf32>
    %67 = vector.shape_cast %64 : vector<8x128xf32> to vector<1x8x128xf32>
    tpu.vector_store %arg7[%c1_32, %c0_33, %c0_34], %67 {strides = array<i32>} : memref<2x8x128xf32, #tpu.memory_space<vmem>>, vector<1x8x128xf32>,
    return
  }
  func.func @transform_0(%arg0: i32) -> (i32, i32, i32) {
    %c0_i32 = arith.constant 0 : i32
    %c0_i32_0 = arith.constant 0 : i32
    %c0_i32_1 = arith.constant 0 : i32
    return %arg0, %c0_i32, %c0_i32_0 : i32, i32, i32
  }
  func.func @transform_1(%arg0: i32) -> (i32, i32, i32) {
    %c0_i32 = arith.constant 0 : i32
    %c1_i32 = arith.constant 1 : i32
    %c0_i32_0 = arith.constant 0 : i32
    return %arg0, %c0_i32, %c1_i32 : i32, i32, i32
  }
  func.func @transform_2(%arg0: i32) -> (i32, i32) {
    %c0_i32 = arith.constant 0 : i32
    %c0_i32_0 = arith.constant 0 : i32
    %c0_i32_1 = arith.constant 0 : i32
    return %c0_i32, %c0_i32_0 : i32, i32
  }
  func.func @transform_3(%arg0: i32) -> (i32, i32) {
    %c0_i32 = arith.constant 0 : i32
    %c0_i32_0 = arith.constant 0 : i32
    %c0_i32_1 = arith.constant 0 : i32
    return %c0_i32, %c0_i32_0 : i32, i32
  }
  func.func @transform_4(%arg0: i32) -> (i32, i32) {
    %c0_i32 = arith.constant 0 : i32
    %c0_i32_0 = arith.constant 0 : i32
    %c0_i32_1 = arith.constant 0 : i32
    return %c0_i32, %c0_i32_0 : i32, i32
  }
  func.func @transform_5(%arg0: i32) -> (i32, i32) {
    %c0_i32 = arith.constant 0 : i32
    %c0_i32_0 = arith.constant 0 : i32
    %c0_i32_1 = arith.constant 0 : i32
    return %c0_i32, %c0_i32_0 : i32, i32
  }
  func.func @transform_6(%arg0: i32) -> (i32, i32, i32) {
    %c0_i32 = arith.constant 0 : i32
    %c0_i32_0 = arith.constant 0 : i32
    %c0_i32_1 = arith.constant 0 : i32
    return %arg0, %c0_i32, %c0_i32_0 : i32, i32, i32
  }
}

</mosaic_0001>

<bundles_post_ra>
// kernel: tpu_custom_call.1
= control target key start
LH: loop header
LB: loop body
LE: loop exit
PB: predicated region body
PF: predicated region fallthrough
CT: control target
= control target key end

     0   :  { %11 = vsyncpa [#allocation3], 0  ;;  %s435_s0 = inlined_call_operand.hbm [shape: f32[2,8,256], index: 0, kind: input, shape index: {}]   ;;  %s436_s1 = inlined_call_operand.hbm [shape: f32[2,8,256], index: 1, kind: input, shape index: {}]   ;;  %s437_s2 = inlined_call_operand.vmem [shape: bf16[8,8], index: 2, kind: input, shape index: {}]   ;;  %s438_s3 = inlined_call_operand.vmem [shape: f32[8,1], index: 3, kind: input, shape index: {}]   ;;  %s439_s4 = inlined_call_operand.vmem [shape: f32[1,128], index: 4, kind: input, shape index: {}]   ;;  %s440_s5 = inlined_call_operand.vmem [shape: f32[1,128], index: 5, kind: input, shape index: {}]   ;;  %s441_s6 = inlined_call_operand.hbm [shape: f32[2,8,128], index: 6, kind: output, shape index: {}]  }
   0x1   :  { %12 = vsyncpa [#allocation6], 0 }
   0x2   :  { %13 = vsyncpa [#allocation4], 0  ;;  %s333_s21 = smov [#allocation2]   ;;  %s258_s25 = scalar_lea.hbm %s435_s0, 256 }
   0x3   :  { %s19_s22 = sshll.u32 %s333_s21, 4  ;;  %p259_p0 = scmp.ne.s32.totalorder %s435_s0, %s258_s25  ;;  %s20_s22 = int_to_ptr.vmem [resolvable:$true] %s19_s22 }
   0x4   :  { %s260_s30 = scalar_lea.hbm %s435_s0, 512  ;;  %p262_p2 = scmp.lt.u32.totalorder %s258_s25, %s435_s0 }
   0x5   :  { %p261_p1 = scmp.lt.u32.totalorder %s260_s30, %s258_s25 }
   0x7   :  { %p263_p3 = por %p262_p2, %p261_p1 }
   0x9   :  { %p264_p4 = pnand %p263_p3, %p259_p0 }
   0xb   :  { %267 = shalt.err (!%p264_p4)
}
   0xc   :  { %s268_s9 = scalar_lea.vmem %s20_s22, 256  ;;  %p273_p6 = scmp.lt.s32.totalorder %s20_s22, %s20_s22 }
   0xd   :  { %p269_p5 = scmp.ne.s32.totalorder %s20_s22, %s268_s9  ;;  %p274_p7 = scmp.lt.s32.totalorder %s268_s9, %s268_s9 }
   0xf   :  { %p275_p8 = por %p274_p7, %p273_p6 }
  0x11   :  { %p276_p9 = pnand %p275_p8, %p269_p5 }
  0x13   :  { %279 = shalt.err (!%p276_p9)
}
  0x14   :  { %s334_s10 = smov 256   ;;  %s335_s11 = smov 128  }
  0x15   :  { %s336_s12 = smov 8   ;;  %s31_s17 = scalar_lea.hbm %s436_s1, 128 }
  0x16   :  { %25 = dma.hbm_to_vmem [thread:$0]  %s435_s0, 256, %s20_s22, [#allocation3], %s334_s10, %s335_s11, %s336_s12  }
  0x17   :  { %s337_s18 = smov [#allocation5]   ;;  %s304_s23 = scalar_lea.hbm %s436_s1, 384 }
  0x18   :  { %s32_s19 = sshll.u32 %s337_s18, 4  ;;  %p281_p10 = scmp.ne.s32.totalorder %s31_s17, %s304_s23  ;;  %s33_s19 = int_to_ptr.vmem [resolvable:$true] %s32_s19 }
  0x19   :  { %s282_s26 = scalar_lea.hbm %s436_s1, 512  ;;  %p283_p11 = scmp.lt.u32.totalorder %s31_s17, %s436_s1 }
  0x1a   :  { %p284_p12 = scmp.lt.u32.totalorder %s282_s26, %s304_s23  ;;  %p286_p0 = scmp.lt.u32.totalorder %s304_s23, %s31_s17 }
  0x1c   :  { %p285_p13 = por %p284_p12, %p283_p11 }
  0x1e   :  { %p287_p1 = por %p286_p0, %p285_p13 }
  0x20   :  { %p288_p2 = pnand %p287_p1, %p281_p10 }
  0x22   :  { %291 = shalt.err (!%p288_p2)
}
  0x23   :  { %s292_s0 = scalar_lea.vmem %s33_s19, 256  ;;  %p297_p4 = scmp.lt.s32.totalorder %s33_s19, %s33_s19 }
  0x24   :  { %p293_p3 = scmp.ne.s32.totalorder %s33_s19, %s292_s0  ;;  %p298_p5 = scmp.lt.s32.totalorder %s292_s0, %s292_s0 }
  0x26   :  { %p299_p6 = por %p298_p5, %p297_p4 }
  0x28   :  { %p300_p7 = pnand %p299_p6, %p293_p3 }
  0x2a   :  { %303 = shalt.err (!%p300_p7)
}
  0x2b   :  { %38 = dma.hbm_to_vmem [thread:$0]  %s31_s17, 256, %s33_s19, [#allocation6], %s334_s10, %s335_s11, %s336_s12  }
  0x2c   :  { %327 = dma.done.wait [#allocation3], 256  }
  0x2d   :  { %328 = vsyncadd [#allocation3], 4294967040 }
  0x2e   :  { %329 = dma.done.wait [#allocation6], 256  }
  0x2f   :  { %330 = vsyncadd [#allocation6], 4294967040  ;;  %v58_v0 = vld [vmem:[#allocation5] sm:$0xff]  ;;  %v143_v1 = vld [vmem:[#allocation5 + $0x8] sm:$0xff]  ;;  %v338_v10 = vmov 0.0   ;;  %vm339_vm0 = vmmov 0  }
  0x30   :  { %59 = vadd.xlane.f32.xlu0 %v58_v0  ;;  %232 = vmatprep.subr.bf16.mxu0 %v338_v10  ;;  %v55_v11 = vld [vmem:[%s438_s3] sm:$0xff]  ;;  %v340_v12 = vmov 0   ;;  %vm95_vm1 = vcmask 1043456   ;;  %vm91_vm2 = vcmask 64512   ;;  %v202_v43 = vld [vmem:[#allocation2 + $0x8] sm:$0xff] }
  0x31   :  { %238 = vmatprep.subr.bf16.mxu1 %v338_v10  ;;  %234 = vmatprep.mubr.msk.bf16.mxu0 %vm339_vm0, %v338_v10  ;;  %v224_v20 = vld [vmem:[%s439_s4] ss:$0 sm:$0xff]  ;;  %s341_s4 = smov [#allocation7]  }
  0x32   :  { %240 = vmatprep.mubr.msk.bf16.mxu1 %vm339_vm0, %v338_v10  ;;  %253 = vset.pattern.permute.xlu0 %v340_v12  ;;  %v225_v22 = vld [vmem:[%s440_s5] ss:$0 sm:$0xff]  ;;  %s211_s5 = sshll.u32 %s341_s4, 4  ;;  %s212_s5 = int_to_ptr.vmem [resolvable:$true] %s211_s5 }
  0x33   :  { %v54_v31 = vld [vmem:[%s437_s2] sm:$0xf]  ;;  %s305_s2 = scalar_lea.vmem %s212_s5, 256  ;;  %p310_p9 = scmp.lt.s32.totalorder %s212_s5, %s212_s5 }
  0x34   :  { %144 = vadd.xlane.f32.xlu0 %v143_v1  ;;  %v139_v36 = vld [vmem:[#allocation2] sm:$0xff]  ;;  %p306_p8 = scmp.ne.s32.totalorder %s212_s5, %s305_s2  ;;  %p311_p10 = scmp.lt.s32.totalorder %s305_s2, %s305_s2 }
  0x36   :  { %p312_p11 = por %p311_p10, %p310_p9 }
  0x38   :  { %p313_p12 = pnand %p312_p11, %p306_p8 }
  0x4a   :  { %88 = vperm.xlu0 %253, %v55_v11  }
  0xbd   :  { %v60_v2 = vpop.xlane.xlu0 %59 }
  0xbe   :  { %v62_v3 = vmul.f32 0.0078125, %v60_v2 }
  0xc0   :  { %v63_v4 = vsub.f32 %v58_v0, %v62_v3 }
  0xc1   :  { %v145_v5 = vpop.xlane.xlu0 %144 }
  0xc2   :  { %v146_v6 = vmul.f32 0.0078125, %v145_v5  ;;  %v64_v7 = vmul.f32 %v63_v4, %v63_v4 }
  0xc4   :  { %v147_v8 = vsub.f32 %v143_v1, %v146_v6  ;;  %65 = vadd.xlane.f32.xlu1 %v64_v7 }
  0xc6   :  { %v148_v9 = vmul.f32 %v147_v8, %v147_v8 }
  0xc8   :  { %149 = vadd.xlane.f32.xlu1 %v148_v9 }
  0xc9   :  { %v89_v34 = vpop.permute.xlu0 %88 }
 0x151   :  { %v66_v13 = vpop.xlane.xlu1 %65 }
 0x152   :  { %v67_v14 = vmul.f32 0.0078125, %v66_v13 }
 0x154   :  { %v68_v15 = vadd.f32 1e-05, %v67_v14 }
 0x155   :  { %v150_v16 = vpop.xlane.xlu1 %149 }
 0x156   :  { %254 = vrsqrt.f32 %v68_v15  ;;  %v151_v17 = vmul.f32 0.0078125, %v150_v16 }
 0x158   :  { %v152_v18 = vadd.f32 1e-05, %v151_v17 }
 0x15a   :  { %256 = vrsqrt.f32 %v152_v18 }
 0x160   :  { %v255_v19 = vpop.eup %254 }
 0x161   :  { %v70_v21 = vmul.f32 %v255_v19, %v63_v4 }
 0x163   :  { %v77_v23 = vmul.f32 %v224_v20, %v70_v21 }
 0x164   :  { %v257_v24 = vpop.eup %256 }
 0x165   :  { %v84_v25 = vadd.f32 %v225_v22, %v77_v23  ;;  %v154_v26 = vmul.f32 %v257_v24, %v147_v8 }
 0x167   :  { %v85_v27 = vpack.c.bf16 %v84_v25, %v84_v25  ;;  %v155_v28 = vmul.f32 %v224_v20, %v154_v26 }
 0x169   :  { %v97_v29 = vsel %vm95_vm1, %v85_v27, 0  ;;  %v156_v30 = vadd.f32 %v225_v22, %v155_v28 }
 0x16a   :  { %233 = vmatpush3.bf16.msra.mxu0 %v97_v29 }
 0x16b   :  { %v157_v32 = vpack.c.bf16 %v156_v30, %v156_v30 }
 0x16d   :  { %235 = vmatmul.mubr.msk.bf16.vlgmr.msra.gmra.mrb[0].mxu0 %vm91_vm2, %v54_v31  ;;  %v159_v33 = vsel %vm95_vm1, %v157_v32, 0 }
 0x16e   :  { %239 = vmatpush3.bf16.msra.mxu1 %v159_v33 }
 0x171   :  { %241 = vmatmul.mubr.msk.bf16.vlgmr.msra.gmra.mrb[0].mxu1 %vm91_vm2, %v54_v31 }
 0x240   :  { %v133_v35 = vpop.f32.mrb[0].mxu0 }
 0x241   :  { %v236_v37 = vpop.f32.mrb[1].mxu0  ;;  %v134_v38 = vadd.f32 %v133_v35, %v89_v34 }
 0x242   :  { %v136_v39 = vpop.f32.mrb[2].mxu0 }
 0x243   :  { %v140_v40 = vmul.f32 %v139_v36, %v134_v38  ;;  %v237_v41 = vpop.f32.mrb[3].mxu0 }
 0x244   :  { %v195_v42 = vpop.f32.mrb[0].mxu1 }
 0x245   :  { %141 = vst [vmem:[#allocation7] sm:$0xff] %v140_v40  ;;  %v196_v44 = vadd.f32 %v195_v42, %v89_v34  ;;  %v242_v45 = vpop.f32.mrb[1].mxu1 }
 0x246   :  { %v198_v46 = vpop.f32.mrb[2].mxu1 }
 0x247   :  { %v203_v47 = vmul.f32 %v202_v43, %v196_v44  ;;  %v243_v48 = vpop.f32.mrb[3].mxu1 }
 0x249   :  { %205 = vst [vmem:[#allocation7 + $0x8] sm:$0xff] %v203_v47 }
 0x24a   :  { %316 = shalt.err (!%p313_p12)
}
 0x24b   :  { %s317_s14 = scalar_lea.hbm %s441_s6, 256 }
 0x24c   :  { %p318_p13 = scmp.ne.s32.totalorder %s441_s6, %s317_s14  ;;  %p321_p0 = scmp.lt.u32.totalorder %s317_s14, %s441_s6 }
 0x24e   :  { %p323_p1 = pnand %p321_p0, %p318_p13 }
 0x250   :  { %326 = shalt.err (!%p323_p1)
}
 0x251   :  { %217 = dma.vmem_to_hbm [thread:$0]  %s212_s5, 256, %s441_s6, [#allocation4], %s335_s11, %s335_s11, %s336_s12  }
 0x252   :  { %331 = dma.done.wait [#allocation4], 256  }
 0x253   :  { %332 = vsyncadd [#allocation4], 4294967040 }
 0x254   :  { %221 = vsyncpa [#allocation3], 1 }
 0x255   :  { %222 = vsyncpa [#allocation6], 1 }
 0x256   :  { %223 = vsyncpa [#allocation4], 1 }

</bundles_post_ra>
